<compile_context>
chip_gen: v6e
topology: v6e:2x2x1
jax: 0.10.0
libtpu: 0.0.40
codegen_flags: <defaults>
</compile_context>

<pallas_src>
import jax
import jax.numpy as jnp
from jax.experimental import pallas as pl
from jax.experimental.pallas import tpu as pltpu

_LANE = 128


def _round_up(x, m):
    return (x + m - 1) // m * m


def _stable_sigmoid(x):
    # exp() only sees non-positive arguments -> no inf intermediates.
    # One EUP reciprocal + two VPU muls instead of two divides.
    e = jnp.exp(-jnp.abs(x))
    inv = pl.reciprocal(1.0 + e, approx=True)
    return jnp.where(x >= 0, inv, e * inv)


def discriminator_kernel(x_ref, w1_ref, b1_ref, w2_ref, b2_ref,
                         w3_ref, b3_ref, o_ref):
    """Full 3-layer MLP forward for one batch tile, all resident in VMEM."""
    cdt = w1_ref.dtype  # compute dtype for MXU operands (bf16 by default)

    # Layer 1: Linear + LeakyReLU(0.2).  K = image_size (unpadded; MXU pads
    # internally).  N = hid_pad (lane multiple) -> unmasked vregs.
    x = x_ref[...].astype(cdt)
    h = jnp.dot(x, w1_ref[...], preferred_element_type=jnp.float32) + b1_ref[...]
    h = jnp.maximum(h, 0.2 * h)

    # Layer 2: Linear + LeakyReLU(0.2)
    h = jnp.dot(h.astype(cdt), w2_ref[...],
                preferred_element_type=jnp.float32) + b2_ref[...]
    h = jnp.maximum(h, 0.2 * h)

    # Layer 3: Linear (w3 N-padded to 128 columns for clean MXU layout; the
    # real logit is column 0) + Sigmoid.  Only the real column is stored, so
    # HBM writeback is 4 B/row.
    h = jnp.dot(h.astype(cdt), w3_ref[...], preferred_element_type=jnp.float32)
    logit = h[:, 0:1] + b3_ref[...]
    o_ref[...] = _stable_sigmoid(logit).astype(o_ref.dtype)


def prepare_params(params, compute_dtype=jnp.bfloat16):
    """Pad + cast weights ONCE (cache per parameter set, not per forward).

    w1: (in,  hid) -> compute_dtype, N padded to a 128 multiple
    w2: (hid, hid) -> compute_dtype, K/N padded to a 128 multiple
    w3: (hid, 1)   -> compute_dtype, K padded, N padded to 128 (col 0 real)
    Biases stay float32 (added after the f32 accumulation).
    Zero padding is numerically exact: padded hidden units get zero weight and
    zero bias -> LeakyReLU(0)=0 -> no contribution downstream.
    """
    w1, b1, w2, b2, w3, b3 = params
    in_dim, hid = w1.shape
    hid_pad = _round_up(hid, _LANE)

    def pad2(a, rows, cols, dtype):
        a = jnp.asarray(a)
        if a.shape == (rows, cols):
            return a.astype(dtype)
        out = jnp.zeros((rows, cols), dtype)
        return out.at[: a.shape[0], : a.shape[1]].set(a.astype(dtype))

    w1p = pad2(w1, in_dim, hid_pad, compute_dtype)
    w2p = pad2(w2, hid_pad, hid_pad, compute_dtype)
    w3p = pad2(w3, hid_pad, _LANE, compute_dtype)
    b1p = pad2(b1.reshape(1, -1), 1, hid_pad, jnp.float32)
    b2p = pad2(b2.reshape(1, -1), 1, hid_pad, jnp.float32)
    b3p = b3.reshape(1, 1).astype(jnp.float32)
    return (w1p, b1p, w2p, b2p, w3p, b3p)


def _choose_batch_tile(B, batch_tile):
    """Generation-aware batch tile.

    - B <= 256: one tile covering the batch (never split a small batch; on
      v5e/v6e the grid is serial and on v7x 32-row halves underfill the MXU).
    - 256 < B <= batch_tile: one tile, rounded to a 256 multiple for clean
      MXU M passes.
    - B > batch_tile: 256-multiple tiles of at most ~batch_tile rows, giving
      >=2 "parallel" grid steps so each v7x TensorCore gets a full tile.
    """
    if B <= 256:
        return _round_up(B, 8)
    if B <= batch_tile:
        return _round_up(B, 256)
    n_tiles = pl.cdiv(B, batch_tile)
    return _round_up(pl.cdiv(B, n_tiles), 256)


def discriminator_forward(x, prepared_params, *, batch_tile=1024):
    """x: (B, image_size) float32 -> (B, 1) float32 probabilities."""
    w1, b1, w2, b2, w3, b3 = prepared_params
    B, in_dim = x.shape
    assert w1.shape[0] == in_dim, "prepared w1 must match image_size"

    bt = _choose_batch_tile(B, batch_tile)
    B_pad = _round_up(B, bt)
    grid = (B_pad // bt,)

    if B_pad != B:
        # Row-only pad (cheap); the feature dim stays unpadded so the x DMA
        # streams exactly the real bytes.
        x = jnp.pad(x, ((0, B_pad - B), (0, 0)))

    full = lambda shape: pl.BlockSpec(shape, lambda i: (0, 0))  # resident, fetched once

    out = pl.pallas_call(
        discriminator_kernel,
        out_shape=jax.ShapeDtypeStruct((B_pad, 1), jnp.float32),
        grid_spec=pltpu.PrefetchScalarGridSpec(
            num_scalar_prefetch=0,
            grid=grid,
            in_specs=[
                pl.BlockSpec((bt, in_dim), lambda i: (i, 0)),  # x tile, unpadded K
                full(w1.shape),   # w1 (in_dim, hid_pad)
                full(b1.shape),   # b1 (1, hid_pad)
                full(w2.shape),   # w2 (hid_pad, hid_pad)
                full(b2.shape),   # b2 (1, hid_pad)
                full(w3.shape),   # w3 (hid_pad, 128), col 0 real
                full(b3.shape),   # b3 (1, 1)
            ],
            # Last dim == full array dim (1) -> legal block; only 4 B/row to HBM.
            out_specs=pl.BlockSpec((bt, 1), lambda i: (i, 0)),
        ),
        compiler_params=pltpu.CompilerParams(
            dimension_semantics=("parallel",),
            vmem_limit_bytes=32 * 1024 * 1024,
        ),
    )(x, w1, b1, w2, b2, w3, b3)

    return out[:B] if B_pad != B else out


def init_params(key, image_size, hidden_size):
    """Deterministic init mimicking PyTorch nn.Linear (uniform +-1/sqrt(fan_in))."""
    def linear_init(k, fan_in, fan_out):
        kw, kb = jax.random.split(k)
        bound = 1.0 / jnp.sqrt(fan_in)
        w = jax.random.uniform(kw, (fan_in, fan_out), jnp.float32, -bound, bound)
        b = jax.random.uniform(kb, (1, fan_out), jnp.float32, -bound, bound)
        return w, b

    k1, k2, k3 = jax.random.split(key, 3)
    w1, b1 = linear_init(k1, image_size, hidden_size)
    w2, b2 = linear_init(k2, hidden_size, hidden_size)
    w3, b3 = linear_init(k3, hidden_size, 1)
    return (w1, b1, w2, b2, w3, b3)


def reference_forward_f32(x, params):
    """Pure-JAX full-f32 reference (HIGHEST-precision dots)."""
    w1, b1, w2, b2, w3, b3 = params
    hi = jax.lax.Precision.HIGHEST
    h = jnp.dot(x, w1, precision=hi) + b1
    h = jnp.where(h > 0, h, 0.2 * h)
    h = jnp.dot(h, w2, precision=hi) + b2
    h = jnp.where(h > 0, h, 0.2 * h)
    return jax.nn.sigmoid(jnp.dot(h, w3, precision=hi) + b3)


def reference_forward_matched(x, params, compute_dtype=jnp.bfloat16):
    """Pure-JAX reference matching the kernel numerics (bf16 operands, f32 acc)."""
    w1, b1, w2, b2, w3, b3 = params

    def dot(a, b):
        return jnp.dot(a.astype(compute_dtype), b.astype(compute_dtype),
                       preferred_element_type=jnp.float32)

    h = dot(x, w1) + b1
    h = jnp.maximum(h, 0.2 * h)
    h = dot(h, w2) + b2
    h = jnp.maximum(h, 0.2 * h)
    return jax.nn.sigmoid(dot(h, w3) + b3)


if __name__ == "__main__":
    # Shapes consistent with the module: image_size=36, hidden_size=256.
    batch = 64
    image_size = 36
    hidden_size = 256

    key = jax.random.PRNGKey(0)
    k_x, k_p = jax.random.split(key)
    x = jax.random.normal(k_x, (batch, image_size), dtype=jnp.float32)

    params = init_params(k_p, image_size, hidden_size)
    prepared = prepare_params(params)          # pad + cast weights ONCE

    fwd = jax.jit(discriminator_forward)
    out = jax.block_until_ready(fwd(x, prepared))
    assert out.shape == (batch, 1)

    # Tight check against a reference that matches the kernel's bf16/f32 math,
    # plus a sanity check against the full-f32 module semantics.
    ref_matched = reference_forward_matched(x, params)
    ref_f32 = reference_forward_f32(x, params)
    err_matched = float(jnp.max(jnp.abs(out - ref_matched)))
    err_f32 = float(jnp.max(jnp.abs(out - ref_f32)))
    assert err_matched < 2e-3, f"mismatch vs bf16-matched reference: {err_matched}"
    assert err_f32 < 3e-2, f"mismatch vs f32 reference: {err_f32}"

    print("KERNEL_OK")
</pallas_src>

<mosaic_0001>
module attributes {stable_mosaic.version = 11 : i64} {
  func.func @discriminator_kernel(%arg0: i32, %arg1: memref<64x36xf32, #tpu.memory_space<vmem>>, %arg2: memref<36x256xbf16, #tpu.memory_space<vmem>>, %arg3: memref<1x256xf32, #tpu.memory_space<vmem>>, %arg4: memref<256x256xbf16, #tpu.memory_space<vmem>>, %arg5: memref<1x256xf32, #tpu.memory_space<vmem>>, %arg6: memref<256x128xbf16, #tpu.memory_space<vmem>>, %arg7: memref<1x1xf32, #tpu.memory_space<vmem>>, %arg8: memref<64x1xf32, #tpu.memory_space<vmem>>) attributes {dimension_semantics = [#tpu.dimension_semantics<parallel>], iteration_bounds = array<i64: 1>, scalar_prefetch = 0 : i64, scratch_operands = 0 : i64, tpu.core_type = #tpu.core_type<tc>, window_params = [{transform_indices = @transform_0, window_bounds = array<i64: 64, 36>}, {pipeline_mode = #tpu.pipeline_mode<synchronous>, transform_indices = @transform_1, window_bounds = array<i64: 36, 256>}, {pipeline_mode = #tpu.pipeline_mode<synchronous>, transform_indices = @transform_2, window_bounds = array<i64: 1, 256>}, {pipeline_mode = #tpu.pipeline_mode<synchronous>, transform_indices = @transform_3, window_bounds = array<i64: 256, 256>}, {pipeline_mode = #tpu.pipeline_mode<synchronous>, transform_indices = @transform_4, window_bounds = array<i64: 1, 256>}, {pipeline_mode = #tpu.pipeline_mode<synchronous>, transform_indices = @transform_5, window_bounds = array<i64: 256, 128>}, {pipeline_mode = #tpu.pipeline_mode<synchronous>, transform_indices = @transform_6, window_bounds = array<i64: 1, 1>}, {transform_indices = @transform_7, window_bounds = array<i64: 64, 1>}]} {
    %c0 = arith.constant 0 : index
    %c0_0 = arith.constant 0 : index
    %0 = vector.load %arg1[%c0, %c0_0] : memref<64x36xf32, #tpu.memory_space<vmem>>, vector<64x36xf32>
    %1 = arith.truncf %0 : vector<64x36xf32> to vector<64x36xbf16>
    %c0_1 = arith.constant 0 : index
    %c0_2 = arith.constant 0 : index
    %2 = vector.load %arg2[%c0_1, %c0_2] : memref<36x256xbf16, #tpu.memory_space<vmem>>, vector<36x256xbf16>
    %cst = arith.constant dense<0.000000e+00> : vector<64x256xf32>
    %3 = tpu.matmul %1, %2, %cst {dimension_numbers = #tpu.dot_dimension_numbers<[1], [0], [0], [1], [0, 0, 1, 1], [], []>} : vector<64x36xbf16>, vector<36x256xbf16>, vector<64x256xf32> -> vector<64x256xf32>
    %c0_3 = arith.constant 0 : index
    %c0_4 = arith.constant 0 : index
    %4 = vector.load %arg3[%c0_3, %c0_4] : memref<1x256xf32, #tpu.memory_space<vmem>>, vector<1x256xf32>
    %5 = vector.broadcast %4 : vector<1x256xf32> to vector<64x256xf32>
    %6 = arith.addf %3, %5 : vector<64x256xf32>
    %cst_5 = arith.constant 2.000000e-01 : f32
    %7 = vector.broadcast %cst_5 : f32 to vector<64x256xf32>
    %8 = arith.mulf %7, %6 : vector<64x256xf32>
    %9 = arith.maximumf %6, %8 : vector<64x256xf32>
    %10 = arith.truncf %9 : vector<64x256xf32> to vector<64x256xbf16>
    %c0_6 = arith.constant 0 : index
    %c0_7 = arith.constant 0 : index
    %11 = vector.load %arg4[%c0_6, %c0_7] : memref<256x256xbf16, #tpu.memory_space<vmem>>, vector<256x256xbf16>
    %cst_8 = arith.constant dense<0.000000e+00> : vector<64x256xf32>
    %12 = tpu.matmul %10, %11, %cst_8 {dimension_numbers = #tpu.dot_dimension_numbers<[1], [0], [0], [1], [0, 0, 1, 1], [], []>} : vector<64x256xbf16>, vector<256x256xbf16>, vector<64x256xf32> -> vector<64x256xf32>
    %c0_9 = arith.constant 0 : index
    %c0_10 = arith.constant 0 : index
    %13 = vector.load %arg5[%c0_9, %c0_10] : memref<1x256xf32, #tpu.memory_space<vmem>>, vector<1x256xf32>
    %14 = vector.broadcast %13 : vector<1x256xf32> to vector<64x256xf32>
    %15 = arith.addf %12, %14 : vector<64x256xf32>
    %cst_11 = arith.constant 2.000000e-01 : f32
    %16 = vector.broadcast %cst_11 : f32 to vector<64x256xf32>
    %17 = arith.mulf %16, %15 : vector<64x256xf32>
    %18 = arith.maximumf %15, %17 : vector<64x256xf32>
    %19 = arith.truncf %18 : vector<64x256xf32> to vector<64x256xbf16>
    %c0_12 = arith.constant 0 : index
    %c0_13 = arith.constant 0 : index
    %20 = vector.load %arg6[%c0_12, %c0_13] : memref<256x128xbf16, #tpu.memory_space<vmem>>, vector<256x128xbf16>
    %cst_14 = arith.constant dense<0.000000e+00> : vector<64x128xf32>
    %21 = tpu.matmul %19, %20, %cst_14 {dimension_numbers = #tpu.dot_dimension_numbers<[1], [0], [0], [1], [0, 0, 1, 1], [], []>} : vector<64x256xbf16>, vector<256x128xbf16>, vector<64x128xf32> -> vector<64x128xf32>
    %22 = vector.extract_strided_slice %21 {offsets = [0, 0], sizes = [64, 1], strides = [1, 1]} : vector<64x128xf32> to vector<64x1xf32>
    %c0_15 = arith.constant 0 : index
    %c0_16 = arith.constant 0 : index
    %23 = vector.load %arg7[%c0_15, %c0_16] : memref<1x1xf32, #tpu.memory_space<vmem>>, vector<1x1xf32>
    %24 = vector.broadcast %23 : vector<1x1xf32> to vector<64x1xf32>
    %25 = arith.addf %22, %24 : vector<64x1xf32>
    %26 = math.absf %25 : vector<64x1xf32>
    %cst_17 = arith.constant 0.000000e+00 : f32
    %27 = vector.broadcast %cst_17 : f32 to vector<64x1xf32>
    %28 = arith.subf %27, %26 : vector<64x1xf32>
    %29 = math.exp %28 : vector<64x1xf32>
    %cst_18 = arith.constant 1.000000e+00 : f32
    %30 = vector.broadcast %cst_18 : f32 to vector<64x1xf32>
    %31 = arith.addf %30, %29 : vector<64x1xf32>
    %32 = tpu.reciprocal %31 {approx = true} : vector<64x1xf32> -> vector<64x1xf32>
    %cst_19 = arith.constant 0.000000e+00 : f32
    %33 = vector.broadcast %cst_19 : f32 to vector<64x1xf32>
    %34 = arith.cmpf oge, %25, %33 : vector<64x1xf32>
    %35 = arith.mulf %29, %32 : vector<64x1xf32>
    %36 = arith.select %34, %32, %35 : vector<64x1xi1>, vector<64x1xf32>
    %c0_20 = arith.constant 0 : index
    %c0_21 = arith.constant 0 : index
    %37 = vector.load %arg8[%c0_20, %c0_21] : memref<64x1xf32, #tpu.memory_space<vmem>>, vector<64x1xf32>
    tpu.vector_store %arg8[%c0_20, %c0_21], %36 {strides = array<i32>} : memref<64x1xf32, #tpu.memory_space<vmem>>, vector<64x1xf32>,
    return
  }
  func.func @transform_0(%arg0: i32) -> (i32, i32) {
    %c0_i32 = arith.constant 0 : i32
    %c0_i32_0 = arith.constant 0 : i32
    return %arg0, %c0_i32 : i32, i32
  }
  func.func @transform_1(%arg0: i32) -> (i32, i32) {
    %c0_i32 = arith.constant 0 : i32
    %c0_i32_0 = arith.constant 0 : i32
    %c0_i32_1 = arith.constant 0 : i32
    return %c0_i32, %c0_i32_0 : i32, i32
  }
  func.func @transform_2(%arg0: i32) -> (i32, i32) {
    %c0_i32 = arith.constant 0 : i32
    %c0_i32_0 = arith.constant 0 : i32
    %c0_i32_1 = arith.constant 0 : i32
    return %c0_i32, %c0_i32_0 : i32, i32
  }
  func.func @transform_3(%arg0: i32) -> (i32, i32) {
    %c0_i32 = arith.constant 0 : i32
    %c0_i32_0 = arith.constant 0 : i32
    %c0_i32_1 = arith.constant 0 : i32
    return %c0_i32, %c0_i32_0 : i32, i32
  }
  func.func @transform_4(%arg0: i32) -> (i32, i32) {
    %c0_i32 = arith.constant 0 : i32
    %c0_i32_0 = arith.constant 0 : i32
    %c0_i32_1 = arith.constant 0 : i32
    return %c0_i32, %c0_i32_0 : i32, i32
  }
  func.func @transform_5(%arg0: i32) -> (i32, i32) {
    %c0_i32 = arith.constant 0 : i32
    %c0_i32_0 = arith.constant 0 : i32
    %c0_i32_1 = arith.constant 0 : i32
    return %c0_i32, %c0_i32_0 : i32, i32
  }
  func.func @transform_6(%arg0: i32) -> (i32, i32) {
    %c0_i32 = arith.constant 0 : i32
    %c0_i32_0 = arith.constant 0 : i32
    %c0_i32_1 = arith.constant 0 : i32
    return %c0_i32, %c0_i32_0 : i32, i32
  }
  func.func @transform_7(%arg0: i32) -> (i32, i32) {
    %c0_i32 = arith.constant 0 : i32
    %c0_i32_0 = arith.constant 0 : i32
    return %arg0, %c0_i32 : i32, i32
  }
}

</mosaic_0001>

<bundles_post_ra>
// kernel: discriminator_forward.1
= control target key start
LH: loop header
LB: loop body
LE: loop exit
PB: predicated region body
PF: predicated region fallthrough
CT: control target
= control target key end

     0   :  { %s1312_s0 = inlined_call_operand.vmem [shape: f32[64,36], index: 0, kind: input, shape index: {}]   ;;  %s1313_s1 = inlined_call_operand.vmem [shape: bf16[36,256], index: 1, kind: input, shape index: {}]   ;;  %s1314_s2 = inlined_call_operand.vmem [shape: f32[1,256], index: 2, kind: input, shape index: {}]   ;;  %s1315_s3 = inlined_call_operand.hbm [shape: bf16[256,256], index: 3, kind: input, shape index: {}]   ;;  %s1316_s4 = inlined_call_operand.vmem [shape: f32[1,256], index: 4, kind: input, shape index: {}]   ;;  %s1317_s5 = inlined_call_operand.hbm [shape: bf16[256,128], index: 5, kind: input, shape index: {}]   ;;  %s1318_s6 = inlined_call_operand.<no memory space> [shape: f32[1,1], index: 6, kind: input, shape index: {}]   ;;  %s1319_s7 = inlined_call_operand.vmem [shape: f32[64,1], index: 7, kind: output, shape index: {}]  }
   0x1   :  { %v12_v0 = vstv %s1318_s6 }
   0x2   :  { %13 = vst [vmem:[#allocation2] sm:$0x1] %v12_v0 }
   0x3   :  { %14 = vsyncpa [#allocation4], 0 }
   0x4   :  { %15 = vsyncpa [#allocation6], 0  ;;  %s1111_s26 = smov [#allocation3]  }
   0x5   :  { %s27_s27 = sshll.u32 %s1111_s26, 4  ;;  %s28_s27 = int_to_ptr.vmem [resolvable:$true] %s27_s27 }
   0x6   :  { %s1075_s28 = scalar_lea.vmem %s28_s27, 4096  ;;  %p1080_p1 = scmp.lt.s32.totalorder %s28_s27, %s28_s27 }
   0x7   :  { %p1076_p0 = scmp.ne.s32.totalorder %s28_s27, %s1075_s28  ;;  %p1081_p2 = scmp.lt.s32.totalorder %s1075_s28, %s1075_s28 }
   0x9   :  { %p1082_p3 = por %p1081_p2, %p1080_p1 }
   0xb   :  { %p1083_p4 = pnand %p1082_p3, %p1076_p0 }
   0xd   :  { %1086 = shalt.err (!%p1083_p4)
}
   0xe   :  { %s1112_s29 = smov 128   ;;  %s1113_s30 = smov 8  }
   0xf   :  { %33 = dma.hbm_to_vmem [thread:$0]  %s1315_s3, 4096, %s28_s27, [#allocation4], %s1112_s29, %s1112_s29, %s1113_s30  }
  0x10   :  { %s1114_s6 = smov [#allocation5]  }
  0x11   :  { %s41_s10 = sshll.u32 %s1114_s6, 4  ;;  %s42_s10 = int_to_ptr.vmem [resolvable:$true] %s41_s10 }
  0x12   :  { %s1095_s11 = scalar_lea.vmem %s42_s10, 2048  ;;  %p1100_p6 = scmp.lt.s32.totalorder %s42_s10, %s42_s10 }
  0x13   :  { %p1096_p5 = scmp.ne.s32.totalorder %s42_s10, %s1095_s11  ;;  %p1101_p7 = scmp.lt.s32.totalorder %s1095_s11, %s1095_s11 }
  0x15   :  { %p1102_p8 = por %p1101_p7, %p1100_p6 }
  0x17   :  { %p1103_p9 = pnand %p1102_p8, %p1096_p5 }
  0x19   :  { %1106 = shalt.err (!%p1103_p9)
}
  0x1a   :  { %s1115_s12 = smov 64   ;;  %s1116_s13 = smov 4  }
  0x1b   :  { %47 = dma.hbm_to_vmem [thread:$0]  %s1317_s5, 2048, %s42_s10, [#allocation6], %s1115_s12, %s1115_s12, %s1116_s13  }
  0x1c   :  { %1107 = dma.done.wait [#allocation4], 4096  }
  0x1d   :  { %1108 = vsyncadd [#allocation4], 4294963200 }
  0x1e   :  { %1109 = dma.done.wait [#allocation6], 2048  }
  0x1f   :  { %1110 = vsyncadd [#allocation6], 4294965248  ;;  %v1117_v1 = vmov 0   ;;  %v73_v2 = vld [vmem:[%s1313_s1 + $0x20] sm:$0x33]  ;;  %vm124_vm0 = vcmask 1041408   ;;  %v76_v63 = vlaneseq }
  0x20   :  { %163 = vmatprep.mubr.bf16.mxu0 %v1117_v1  ;;  %v861_v3 = vcombine.high %v73_v2, %v73_v2  ;;  %v860_v4 = vcombine.low %v73_v2, %v73_v2  ;;  %v965_v5 = vld [vmem:[%s1313_s1 + $0x14] ss:$8 sps:$4 sm:$0xff]   ;;  %v967_v7 = vld [vmem:[%s1313_s1 + $0x10] ss:$8 sps:$4 sm:$0xff]   ;;  %v968_v8 = vld [vmem:[%s1313_s1 + $0x4] ss:$8 sps:$4 sm:$0xff]  }
  0x21   :  { %v970_v9 = vld [vmem:[%s1313_s1] ss:$8 sps:$4 sm:$0xff]   ;;  %v973_v12 = vld [vmem:[#allocation3 + $0x70] ss:$8 sps:$4 sm:$0xff]   ;;  %vm111_vm1 = vcmask 293888   ;;  %v1210_v0 = vshrl.u32 %v76_v63, 7 }
  0x22   :  { %862 = vmatprep.subr.msk.bf16.mxu0 %vm124_vm0, %v861_v3  ;;  %v126_v6 = vsel %vm124_vm0, %v860_v4, 0  ;;  %v57_v10 = vld [vmem:[%s1312_s0] sm:$0xff]  ;;  %v58_v14 = vld [vmem:[%s1312_s0 + $0x8] sm:$0xff]  ;;  %v979_v18 = vld [vmem:[#allocation3 + $0x50] ss:$8 sps:$4 sm:$0xff]   ;;  %vm841_vm2 = vcmask 7168  }
  0x23   :  { %142 = vmatpush1.bf16.msra.mxu0 %v126_v6  ;;  %v971_v11 = vld [vmem:[#allocation3 + $0x74] ss:$8 sps:$4 sm:$0xff]   ;;  %v974_v13 = vld [vmem:[#allocation3 + $0x64] ss:$8 sps:$4 sm:$0xff]   ;;  %v976_v15 = vld [vmem:[#allocation3 + $0x60] ss:$8 sps:$4 sm:$0xff]   ;;  %v65_v17 = vpack.c.bf16 %v58_v14, %v57_v10 }
  0x24   :  { %143 = vmatprep.subr.bf16.mxu0 %v965_v5  ;;  %448 = vmatprep.subr.bf16.mxu1 %v971_v11  ;;  %v977_v16 = vld [vmem:[#allocation3 + $0x54] ss:$8 sps:$4 sm:$0xff]   ;;  %v980_v19 = vld [vmem:[#allocation3 + $0x44] ss:$8 sps:$4 sm:$0xff]   ;;  %v982_v22 = vld [vmem:[#allocation3 + $0x40] ss:$8 sps:$4 sm:$0xff]  }
  0x25   :  { %449 = vmatpush1.bf16.msra.mxu1 %v973_v12  ;;  %v59_v20 = vld [vmem:[%s1312_s0 + $0x10] sm:$0xff]  ;;  %v60_v21 = vld [vmem:[%s1312_s0 + $0x18] sm:$0xff]  ;;  %v61_v27 = vld [vmem:[%s1312_s0 + $0x20] sm:$0xff]  ;;  %v78_v2 = vsub.s32 0, %v1210_v0 }
  0x26   :  { %450 = vmatprep.subr.bf16.mxu1 %v974_v13  ;;  %v983_v23 = vld [vmem:[#allocation3 + $0x34] ss:$8 sps:$4 sm:$0xff]   ;;  %v66_v24 = vpack.c.bf16 %v60_v21, %v59_v20  ;;  %v985_v25 = vld [vmem:[#allocation3 + $0x30] ss:$8 sps:$4 sm:$0xff]   ;;  %v986_v26 = vld [vmem:[#allocation3 + $0x24] ss:$8 sps:$4 sm:$0xff]  }
  0x27   :  { %144 = vmatpush1.bf16.msra.mxu0 %v967_v7  ;;  %v62_v28 = vld [vmem:[%s1312_s0 + $0x28] sm:$0xff]  ;;  %v989_v30 = vld [vmem:[#allocation3 + $0x14] ss:$8 sps:$4 sm:$0xff]   ;;  %v991_v32 = vld [vmem:[#allocation3 + $0x10] ss:$8 sps:$4 sm:$0xff]  }
  0x28   :  { %145 = vmatprep.subr.bf16.mxu0 %v968_v8  ;;  %v988_v29 = vld [vmem:[#allocation3 + $0x20] ss:$8 sps:$4 sm:$0xff]   ;;  %v67_v31 = vpack.c.bf16 %v62_v28, %v61_v27  ;;  %v992_v33 = vld [vmem:[#allocation3 + $0x4] ss:$8 sps:$4 sm:$0xff]   ;;  %v64_v35 = vld [vmem:[%s1312_s0 + $0x38] sm:$0xff] }
  0x29   :  { %451 = vmatpush1.bf16.msra.mxu1 %v976_v15  ;;  %v63_v34 = vld [vmem:[%s1312_s0 + $0x30] sm:$0xff]  ;;  %v994_v36 = vld [vmem:[#allocation3] ss:$8 sps:$4 sm:$0xff]   ;;  %v1019_v54 = vld [vmem:[#allocation5 + $0x78] sm:$0xff]  }
  0x2a   :  { %452 = vmatprep.subr.bf16.mxu1 %v977_v16  ;;  %v995_v37 = vld [vmem:[#allocation3 + $0xf4] ss:$8 sps:$4 sm:$0xff]   ;;  %v68_v38 = vpack.c.bf16 %v64_v35, %v63_v34  ;;  %v997_v39 = vld [vmem:[#allocation3 + $0xf0] ss:$8 sps:$4 sm:$0xff]   ;;  %v998_v40 = vld [vmem:[#allocation3 + $0xe4] ss:$8 sps:$4 sm:$0xff]  }
  0x2b   :  { %146 = vmatpush1.bf16.msra.mxu0 %v970_v9  ;;  %v1000_v41 = vld [vmem:[#allocation3 + $0xe0] ss:$8 sps:$4 sm:$0xff]   ;;  %v1001_v42 = vld [vmem:[#allocation3 + $0xd4] ss:$8 sps:$4 sm:$0xff]   ;;  %v1003_v43 = vld [vmem:[#allocation3 + $0xd0] ss:$8 sps:$4 sm:$0xff]  }
  0x2c   :  { %v1004_v44 = vld [vmem:[#allocation3 + $0xc4] ss:$8 sps:$4 sm:$0xff]   ;;  %v1006_v45 = vld [vmem:[#allocation3 + $0xc0] ss:$8 sps:$4 sm:$0xff]   ;;  %v1007_v46 = vld [vmem:[#allocation3 + $0xb4] ss:$8 sps:$4 sm:$0xff]   ;;  %916 = vmatprep.subr.bf16.mxu0 %v1019_v54 }
  0x2d   :  { %453 = vmatpush1.bf16.msra.mxu1 %v979_v18  ;;  %v1009_v47 = vld [vmem:[#allocation3 + $0xb0] ss:$8 sps:$4 sm:$0xff]   ;;  %v1010_v48 = vld [vmem:[#allocation3 + $0xa4] ss:$8 sps:$4 sm:$0xff]   ;;  %v1012_v49 = vld [vmem:[#allocation3 + $0xa0] ss:$8 sps:$4 sm:$0xff]  }
  0x2e   :  { %863 = vmatmul.mubr.msk.bf16.vlgmr.msra.gmra.mxu0 %vm111_vm1, %v65_v17  ;;  %454 = vmatprep.subr.bf16.mxu1 %v980_v19  ;;  %v1013_v50 = vld [vmem:[#allocation3 + $0x94] ss:$8 sps:$4 sm:$0xff]   ;;  %v1015_v51 = vld [vmem:[#allocation3 + $0x90] ss:$8 sps:$4 sm:$0xff]   ;;  %v1016_v52 = vld [vmem:[#allocation3 + $0x84] ss:$8 sps:$4 sm:$0xff]  }
  0x2f   :  { %173 = vmatprep.mubr.bf16.mxu0 %v1117_v1  ;;  %v1018_v53 = vld [vmem:[#allocation3 + $0x80] ss:$8 sps:$4 sm:$0xff]   ;;  %v1020_v55 = vld [vmem:[#allocation5 + $0x38] sm:$0xff]   ;;  %v1021_v56 = vld [vmem:[#allocation5 + $0x70] sm:$0xff]  }
  0x30   :  { %917 = vmatpush3.bf16.msra.mxu0 %v1020_v55  ;;  %v1022_v57 = vld [vmem:[#allocation5 + $0x30] sm:$0xff]   ;;  %v1023_v58 = vld [vmem:[#allocation5 + $0x68] sm:$0xff]   ;;  %v1025_v60 = vld [vmem:[#allocation5 + $0x60] sm:$0xff]  }
  0x31   :  { %455 = vmatpush1.bf16.msra.mxu1 %v982_v22  ;;  %918 = vmatprep.subr.bf16.mxu0 %v1021_v56  ;;  %v1024_v59 = vld [vmem:[#allocation5 + $0x28] sm:$0xff]   ;;  %v1026_v61 = vld [vmem:[#allocation5 + $0x20] sm:$0xff]   ;;  %v1027_v62 = vld [vmem:[#allocation5 + $0x58] sm:$0xff]  }
  0x32   :  { %456 = vmatprep.subr.bf16.mxu1 %v983_v23  ;;  %v74_v3 = vld [vmem:[%s1314_s2] sm:$0x3] }
  0x33   :  { %v79_v5 = vrot.slane %v74_v3, %v78_v2 }
  0x34   :  { %919 = vmatpush3.bf16.msra.mxu0 %v1022_v57 }
  0x35   :  { %457 = vmatpush1.bf16.msra.mxu1 %v985_v25  ;;  %920 = vmatprep.subr.bf16.mxu0 %v1023_v58 }
  0x36   :  { %864 = vmatmul.mubr.msk.bf16.gmra.mxu0 %vm111_vm1, %v66_v24  ;;  %458 = vmatprep.subr.bf16.mxu1 %v986_v26 }
  0x37   :  { %183 = vmatprep.mubr.bf16.mxu0 %v1117_v1 }
  0x38   :  { %921 = vmatpush3.bf16.msra.mxu0 %v1024_v59 }
  0x39   :  { %459 = vmatpush1.bf16.msra.mxu1 %v988_v29  ;;  %922 = vmatprep.subr.bf16.mxu0 %v1025_v60 }
  0x3a   :  { %460 = vmatprep.subr.bf16.mxu1 %v989_v30 }
  0x3c   :  { %923 = vmatpush3.bf16.msra.mxu0 %v1026_v61 }
  0x3d   :  { %461 = vmatpush1.bf16.msra.mxu1 %v991_v32  ;;  %924 = vmatprep.subr.bf16.mxu0 %v1027_v62 }
  0x3e   :  { %865 = vmatmul.mubr.msk.bf16.gmra.mxu0 %vm111_vm1, %v67_v31  ;;  %462 = vmatprep.subr.bf16.mxu1 %v992_v33 }
  0x3f   :  { %193 = vmatprep.mubr.bf16.mxu0 %v1117_v1  ;;  %v82_v1 = vsub.s32 1, %v1210_v0 }
  0x41   :  { %463 = vmatpush1.bf16.msra.mxu1 %v994_v36  ;;  %v1219_v4 = vrot.slane %v74_v3, %v82_v1 }
  0x42   :  { %464 = vmatprep.subr.bf16.mxu1 %v995_v37 }
  0x45   :  { %465 = vmatpush2.bf16.msra.mxu1 %v997_v39 }
  0x46   :  { %866 = vmatmul.mubr.msk.bf16.gmra.mxu0 %vm111_vm1, %v68_v38  ;;  %466 = vmatprep.subr.bf16.mxu1 %v998_v40 }
  0x49   :  { %467 = vmatpush2.bf16.msra.mxu1 %v1000_v41 }
  0x4a   :  { %468 = vmatprep.subr.bf16.mxu1 %v1001_v42 }
  0x4d   :  { %469 = vmatpush2.bf16.msra.mxu1 %v1003_v43 }
  0x4e   :  { %470 = vmatprep.subr.bf16.mxu1 %v1004_v44 }
  0x51   :  { %471 = vmatpush2.bf16.msra.mxu1 %v1006_v45 }
  0x52   :  { %472 = vmatprep.subr.bf16.mxu1 %v1007_v46 }
  0x55   :  { %473 = vmatpush2.bf16.msra.mxu1 %v1009_v47 }
  0x56   :  { %474 = vmatprep.subr.bf16.mxu1 %v1010_v48 }
  0x59   :  { %475 = vmatpush2.bf16.msra.mxu1 %v1012_v49 }
  0x5a   :  { %476 = vmatprep.subr.bf16.mxu1 %v1013_v50 }
  0x5d   :  { %477 = vmatpush2.bf16.msra.mxu1 %v1015_v51 }
  0x5e   :  { %478 = vmatprep.subr.bf16.mxu1 %v1016_v52 }
  0x61   :  { %479 = vmatpush2.bf16.msra.mxu1 %v1018_v53 }
  0xee   :  { %v165_v6 = vpop.f32.mrf.mxu0 }
  0xef   :  { %v166_v9 = vadd.f32 %v165_v6, %v79_v5 }
  0xf0   :  { %v167_v7 = vpop.f32.mrf.mxu0 }
  0xf1   :  { %v168_v8 = vadd.f32 %v167_v7, %v1219_v4  ;;  %v204_v16 = vmul.f32 0.2, %v166_v9 }
  0xf2   :  { %v169_v10 = vpop.f32.mrf.mxu0 }
  0xf3   :  { %v170_v11 = vadd.f32 %v169_v10, %v79_v5  ;;  %v205_v13 = vmul.f32 0.2, %v168_v8  ;;  %v220_v24 = vmax.f32 %v166_v9, %v204_v16 }
  0xf4   :  { %v171_v12 = vpop.f32.mrf.mxu0 }
  0xf5   :  { %v206_v14 = vmul.f32 0.2, %v170_v11  ;;  %v172_v15 = vadd.f32 %v171_v12, %v1219_v4  ;;  %v221_v22 = vmax.f32 %v168_v8, %v205_v13 }
  0xf6   :  { %v175_v17 = vpop.f32.mrf.mxu0 }
  0xf7   :  { %v207_v18 = vmul.f32 0.2, %v172_v15  ;;  %v222_v19 = vmax.f32 %v170_v11, %v206_v14  ;;  %v176_v25 = vadd.f32 %v175_v17, %v79_v5 }
  0xf8   :  { %v177_v20 = vpop.f32.mrf.mxu0 }
  0xf9   :  { %v178_v21 = vadd.f32 %v177_v20, %v1219_v4  ;;  %v223_v23 = vmax.f32 %v172_v15, %v207_v18  ;;  %v236_v30 = vpack.c.bf16 %v222_v19, %v220_v24  ;;  %v208_v34 = vmul.f32 0.2, %v176_v25  ;;  %v1029_v19 = vld [vmem:[#allocation5 + $0x50] sm:$0xff]   ;;  %v276_v24 = vld [vmem:[%s1316_s4] sm:$0x3] }
  0xfa   :  { %v179_v26 = vpop.f32.mrf.mxu0  ;;  %v1030_v20 = vld [vmem:[#allocation5 + $0x10] sm:$0xff]  }
  0xfb   :  { %v180_v27 = vadd.f32 %v179_v26, %v79_v5  ;;  %v237_v28 = vpack.c.bf16 %v223_v23, %v221_v22  ;;  %v209_v31 = vmul.f32 0.2, %v178_v21  ;;  %v224_v42 = vmax.f32 %v176_v25, %v208_v34  ;;  %v1033_v22 = vld [vmem:[#allocation5 + $0x40] sm:$0xff]  }
  0xfc   :  { %v181_v29 = vpop.f32.mrf.mxu0  ;;  %v1034_v23 = vld [vmem:[#allocation5] sm:$0xff]   ;;  %v1236_v25 = vrot.slane %v276_v24, %v82_v1  ;;  %v281_v26 = vrot.slane %v276_v24, %v78_v2 }
  0xfd   :  { %v210_v32 = vmul.f32 0.2, %v180_v27  ;;  %v182_v33 = vadd.f32 %v181_v29, %v1219_v4  ;;  %480 = vmatprep.mubr.bf16.mxu1 %v237_v28  ;;  %v225_v39 = vmax.f32 %v178_v21, %v209_v31  ;;  %v1031_v21 = vld [vmem:[#allocation5 + $0x48] sm:$0xff]  }
  0xfe   :  { %v185_v35 = vpop.f32.mrf.mxu0  ;;  %481 = vmatmul.mubr.bf16.vlgmr.msra.gmra.mxu1 %v236_v30 }
  0xff   :  { %v211_v36 = vmul.f32 0.2, %v182_v33  ;;  %v226_v37 = vmax.f32 %v180_v27, %v210_v32  ;;  %v186_v43 = vadd.f32 %v185_v35, %v79_v5 }
 0x100   :  { %v187_v38 = vpop.f32.mrf.mxu0 }
 0x101   :  { %v227_v40 = vmax.f32 %v182_v33, %v211_v36  ;;  %v188_v41 = vadd.f32 %v187_v38, %v1219_v4  ;;  %v238_v48 = vpack.c.bf16 %v226_v37, %v224_v42  ;;  %v212_v52 = vmul.f32 0.2, %v186_v43 }
 0x102   :  { %v189_v44 = vpop.f32.mrf.mxu0 }
 0x103   :  { %v190_v45 = vadd.f32 %v189_v44, %v79_v5  ;;  %v239_v46 = vpack.c.bf16 %v227_v40, %v225_v39  ;;  %v213_v49 = vmul.f32 0.2, %v188_v41  ;;  %v228_v60 = vmax.f32 %v186_v43, %v212_v52 }
 0x104   :  { %v191_v47 = vpop.f32.mrf.mxu0 }
 0x105   :  { %v214_v50 = vmul.f32 0.2, %v190_v45  ;;  %v192_v51 = vadd.f32 %v191_v47, %v1219_v4  ;;  %490 = vmatprep.mubr.bf16.mxu1 %v239_v46  ;;  %v229_v57 = vmax.f32 %v188_v41, %v213_v49 }
 0x106   :  { %v195_v53 = vpop.f32.mrf.mxu0  ;;  %491 = vmatmul.mubr.bf16.gmra.mxu1 %v238_v48 }
 0x107   :  { %v215_v54 = vmul.f32 0.2, %v192_v51  ;;  %v230_v55 = vmax.f32 %v190_v45, %v214_v50  ;;  %v196_v61 = vadd.f32 %v195_v53, %v79_v5 }
 0x108   :  { %v197_v56 = vpop.f32.mrf.mxu0 }
 0x109   :  { %v231_v58 = vmax.f32 %v192_v51, %v215_v54  ;;  %v198_v59 = vadd.f32 %v197_v56, %v1219_v4  ;;  %v240_v7 = vpack.c.bf16 %v230_v55, %v228_v60  ;;  %v216_v11 = vmul.f32 0.2, %v196_v61 }
 0x10a   :  { %v199_v62 = vpop.f32.mrf.mxu0 }
 0x10b   :  { %v200_v63 = vadd.f32 %v199_v62, %v79_v5  ;;  %v241_v3 = vpack.c.bf16 %v231_v58, %v229_v57  ;;  %v217_v8 = vmul.f32 0.2, %v198_v59  ;;  %v232_v16 = vmax.f32 %v196_v61, %v216_v11  ;;  %v1028_v5 = vld [vmem:[#allocation5 + $0x18] sm:$0xff]  }
 0x10c   :  { %v201_v6 = vpop.f32.mrf.mxu0  ;;  %925 = vmatpush3.bf16.msra.mxu0 %v1028_v5 }
 0x10d   :  { %v218_v9 = vmul.f32 0.2, %v200_v63  ;;  %v202_v10 = vadd.f32 %v201_v6, %v1219_v4  ;;  %500 = vmatprep.mubr.bf16.mxu1 %v241_v3  ;;  %v233_v14 = vmax.f32 %v198_v59, %v217_v8  ;;  %926 = vmatprep.subr.bf16.mxu0 %v1029_v19  ;;  %v1032_v4 = vld [vmem:[#allocation5 + $0x8] sm:$0xff]  }
 0x10e   :  { %501 = vmatmul.mubr.bf16.gmra.mxu1 %v240_v7 }
 0x10f   :  { %v219_v12 = vmul.f32 0.2, %v202_v10  ;;  %v234_v13 = vmax.f32 %v200_v63, %v218_v9 }
 0x110   :  { %927 = vmatpush3.bf16.msra.mxu0 %v1030_v20 }
 0x111   :  { %v235_v15 = vmax.f32 %v202_v10, %v219_v12  ;;  %v242_v18 = vpack.c.bf16 %v234_v13, %v232_v16  ;;  %928 = vmatprep.subr.bf16.mxu0 %v1031_v21 }
 0x113   :  { %v243_v17 = vpack.c.bf16 %v235_v15, %v233_v14 }
 0x114   :  { %929 = vmatpush3.bf16.msra.mxu0 %v1032_v4 }
 0x115   :  { %510 = vmatprep.mubr.bf16.mxu1 %v243_v17  ;;  %930 = vmatprep.subr.bf16.mxu0 %v1033_v22 }
 0x116   :  { %511 = vmatmul.mubr.bf16.gmra.mxu1 %v242_v18 }
 0x118   :  { %931 = vmatpush3.bf16.msra.mxu0 %v1034_v23 }
 0x1be   :  { %v482_v27 = vpop.f32.mrf.mxu1 }
 0x1bf   :  { %v483_v30 = vadd.f32 %v482_v27, %v281_v26 }
 0x1c0   :  { %v484_v28 = vpop.f32.mrf.mxu1 }
 0x1c1   :  { %v485_v29 = vadd.f32 %v484_v28, %v1236_v25  ;;  %v521_v37 = vmul.f32 0.2, %v483_v30 }
 0x1c2   :  { %v486_v31 = vpop.f32.mrf.mxu1 }
 0x1c3   :  { %v487_v32 = vadd.f32 %v486_v31, %v281_v26  ;;  %v522_v34 = vmul.f32 0.2, %v485_v29  ;;  %v537_v42 = vmax.f32 %v483_v30, %v521_v37 }
 0x1c4   :  { %v488_v33 = vpop.f32.mrf.mxu1 }
 0x1c5   :  { %v523_v35 = vmul.f32 0.2, %v487_v32  ;;  %v489_v36 = vadd.f32 %v488_v33, %v1236_v25  ;;  %v538_v41 = vmax.f32 %v485_v29, %v522_v34 }
 0x1c6   :  { %v492_v38 = vpop.f32.mrf.mxu1 }
 0x1c7   :  { %v524_v39 = vmul.f32 0.2, %v489_v36  ;;  %v539_v1 = vmax.f32 %v487_v32, %v523_v35  ;;  %v493_v43 = vadd.f32 %v492_v38, %v281_v26  ;;  %v915_v38 = vld [vmem:[#allocation2] ss:$0 sm:$0xff] }
 0x1c8   :  { %v494_v40 = vpop.f32.mrf.mxu1 }
 0x1c9   :  { %v540_v0 = vmax.f32 %v489_v36, %v524_v39  ;;  %v495_v2 = vadd.f32 %v494_v40, %v1236_v25  ;;  %v553_v47 = vpack.c.bf16 %v539_v1, %v537_v42  ;;  %v525_v52 = vmul.f32 0.2, %v493_v43 }
 0x1ca   :  { %v496_v44 = vpop.f32.mrf.mxu1 }
 0x1cb   :  { %v497_v45 = vadd.f32 %v496_v44, %v281_v26  ;;  %v554_v46 = vpack.c.bf16 %v540_v0, %v538_v41  ;;  %v526_v49 = vmul.f32 0.2, %v495_v2  ;;  %v541_v60 = vmax.f32 %v493_v43, %v525_v52 }
 0x1cc   :  { %v498_v48 = vpop.f32.mrf.mxu1 }
 0x1cd   :  { %v527_v50 = vmul.f32 0.2, %v497_v45  ;;  %v499_v51 = vadd.f32 %v498_v48, %v1236_v25  ;;  %721 = vmatprep.mubr.bf16.mxu0 %v554_v46  ;;  %v542_v57 = vmax.f32 %v495_v2, %v526_v49 }
 0x1ce   :  { %v502_v53 = vpop.f32.mrf.mxu1  ;;  %722 = vmatmul.mubr.bf16.vlgmr.msra.gmra.mxu0 %v553_v47 }
 0x1cf   :  { %v528_v54 = vmul.f32 0.2, %v499_v51  ;;  %v543_v55 = vmax.f32 %v497_v45, %v527_v50  ;;  %v503_v61 = vadd.f32 %v502_v53, %v281_v26 }
 0x1d0   :  { %v504_v56 = vpop.f32.mrf.mxu1 }
 0x1d1   :  { %v544_v58 = vmax.f32 %v499_v51, %v528_v54  ;;  %v505_v59 = vadd.f32 %v504_v56, %v1236_v25  ;;  %v555_v7 = vpack.c.bf16 %v543_v55, %v541_v60  ;;  %v529_v11 = vmul.f32 0.2, %v503_v61 }
 0x1d2   :  { %v506_v62 = vpop.f32.mrf.mxu1 }
 0x1d3   :  { %v507_v63 = vadd.f32 %v506_v62, %v281_v26  ;;  %v556_v3 = vpack.c.bf16 %v544_v58, %v542_v57  ;;  %v530_v8 = vmul.f32 0.2, %v505_v59  ;;  %v545_v5 = vmax.f32 %v503_v61, %v529_v11 }
 0x1d4   :  { %v508_v6 = vpop.f32.mrf.mxu1 }
 0x1d5   :  { %v531_v9 = vmul.f32 0.2, %v507_v63  ;;  %v509_v10 = vadd.f32 %v508_v6, %v1236_v25  ;;  %729 = vmatprep.mubr.bf16.mxu0 %v556_v3  ;;  %v546_v16 = vmax.f32 %v505_v59, %v530_v8 }
 0x1d6   :  { %v512_v12 = vpop.f32.mrf.mxu1  ;;  %730 = vmatmul.mubr.bf16.gmra.mxu0 %v555_v7 }
 0x1d7   :  { %v532_v13 = vmul.f32 0.2, %v509_v10  ;;  %v547_v14 = vmax.f32 %v507_v63, %v531_v9  ;;  %v513_v19 = vadd.f32 %v512_v12, %v281_v26 }
 0x1d8   :  { %v514_v15 = vpop.f32.mrf.mxu1 }
 0x1d9   :  { %v548_v17 = vmax.f32 %v509_v10, %v532_v13  ;;  %v515_v18 = vadd.f32 %v514_v15, %v1236_v25  ;;  %v557_v23 = vpack.c.bf16 %v547_v14, %v545_v5  ;;  %v533_v29 = vmul.f32 0.2, %v513_v19 }
 0x1da   :  { %v516_v20 = vpop.f32.mrf.mxu1 }
 0x1db   :  { %v517_v21 = vadd.f32 %v516_v20, %v281_v26  ;;  %v558_v4 = vpack.c.bf16 %v548_v17, %v546_v16  ;;  %v534_v24 = vmul.f32 0.2, %v515_v18  ;;  %v549_v34 = vmax.f32 %v513_v19, %v533_v29 }
 0x1dc   :  { %v518_v22 = vpop.f32.mrf.mxu1 }
 0x1dd   :  { %v535_v27 = vmul.f32 0.2, %v517_v21  ;;  %v519_v28 = vadd.f32 %v518_v22, %v1236_v25  ;;  %737 = vmatprep.mubr.bf16.mxu0 %v558_v4  ;;  %v550_v32 = vmax.f32 %v515_v18, %v534_v24 }
 0x1de   :  { %738 = vmatmul.mubr.bf16.gmra.mxu0 %v557_v23 }
 0x1df   :  { %v536_v30 = vmul.f32 0.2, %v519_v28  ;;  %v551_v31 = vmax.f32 %v517_v21, %v535_v27 }
 0x1e1   :  { %v552_v33 = vmax.f32 %v519_v28, %v536_v30  ;;  %v559_v36 = vpack.c.bf16 %v551_v31, %v549_v34 }
 0x1e3   :  { %v560_v35 = vpack.c.bf16 %v552_v33, %v550_v32 }
 0x1e5   :  { %745 = vmatprep.mubr.bf16.mxu0 %v560_v35 }
 0x1e6   :  { %746 = vmatmul.mubr.bf16.gmra.mxu0 %v559_v36 }
 0x28e   :  { %v932_v26 = vpop.f32.mrf.mxu0 }
 0x290   :  { %v933_v37 = vpop.f32.mrf.mxu0 }
 0x291   :  { %v934_v39 = vadd.f32 %v933_v37, %v932_v26 }
 0x292   :  { %v935_v1 = vpop.f32.mrf.mxu0 }
 0x293   :  { %v1248_v40 = vadd.f32 %v934_v39, %v915_v38 }
 0x294   :  { %v936_v25 = vpop.f32.mrf.mxu0 }
 0x295   :  { %v769_v41 = vand.u32 2147483647, %v1248_v40  ;;  %v937_v0 = vadd.f32 %v936_v25, %v935_v1  ;;  %vm817_vm3 = vcmp.ge.f32.partialorder %v1248_v40, 0.0 }
 0x296   :  { %v938_v2 = vpop.f32.mrf.mxu0 }
 0x297   :  { %v777_v42 = vsub.f32 0.0, %v769_v41  ;;  %v1251_v43 = vadd.f32 %v937_v0, %v915_v38 }
 0x298   :  { %v939_v44 = vpop.f32.mrf.mxu0 }
 0x299   :  { %v785_v45 = vmul.f32 1.442695, %v777_v42  ;;  %v770_v46 = vand.u32 2147483647, %v1251_v43  ;;  %v940_v47 = vadd.f32 %v939_v44, %v938_v2  ;;  %vm818_vm4 = vcmp.ge.f32.partialorder %v1251_v43, 0.0 }
 0x29a   :  { %v941_v48 = vpop.f32.mrf.mxu0 }
 0x29b   :  { %1035 = vpow2.f32 %v785_v45  ;;  %v778_v49 = vsub.f32 0.0, %v770_v46  ;;  %v1254_v50 = vadd.f32 %v940_v47, %v915_v38 }
 0x29c   :  { %v942_v51 = vpop.f32.mrf.mxu0 }
 0x29d   :  { %v787_v52 = vmul.f32 1.442695, %v778_v49  ;;  %v771_v53 = vand.u32 2147483647, %v1254_v50  ;;  %v943_v54 = vadd.f32 %v942_v51, %v941_v48  ;;  %vm819_vm5 = vcmp.ge.f32.partialorder %v1254_v50, 0.0 }
 0x29e   :  { %v944_v55 = vpop.f32.mrf.mxu0 }
 0x29f   :  { %1037 = vpow2.f32 %v787_v52  ;;  %v779_v56 = vsub.f32 0.0, %v771_v53  ;;  %v1257_v57 = vadd.f32 %v943_v54, %v915_v38 }
 0x2a0   :  { %v945_v58 = vpop.f32.mrf.mxu0 }
 0x2a1   :  { %v789_v59 = vmul.f32 1.442695, %v779_v56  ;;  %v772_v60 = vand.u32 2147483647, %v1257_v57  ;;  %v946_v61 = vadd.f32 %v945_v58, %v944_v55  ;;  %vm820_vm6 = vcmp.ge.f32.partialorder %v1257_v57, 0.0 }
 0x2a2   :  { %v947_v62 = vpop.f32.mrf.mxu0 }
 0x2a3   :  { %1039 = vpow2.f32 %v789_v59  ;;  %v780_v63 = vsub.f32 0.0, %v772_v60  ;;  %v1260_v3 = vadd.f32 %v946_v61, %v915_v38 }
 0x2a4   :  { %v948_v6 = vpop.f32.mrf.mxu0 }
 0x2a5   :  { %v791_v7 = vmul.f32 1.442695, %v780_v63  ;;  %v773_v8 = vand.u32 2147483647, %v1260_v3  ;;  %v949_v9 = vadd.f32 %v948_v6, %v947_v62  ;;  %vm821_vm7 = vcmp.ge.f32.partialorder %v1260_v3, 0.0 }
 0x2a6   :  { %v950_v10 = vpop.f32.mrf.mxu0 }
 0x2a7   :  { %1041 = vpow2.f32 %v791_v7  ;;  %v781_v11 = vsub.f32 0.0, %v773_v8  ;;  %v1263_v12 = vadd.f32 %v949_v9, %v915_v38 }
 0x2a8   :  { %v1036_v13 = vpop.eup %1035  ;;  %v951_v14 = vpop.f32.mrf.mxu0 }
 0x2a9   :  { %v801_v15 = vadd.f32 1.0, %v1036_v13  ;;  %v793_v16 = vmul.f32 1.442695, %v781_v11  ;;  %v774_v17 = vand.u32 2147483647, %v1263_v12  ;;  %v952_v18 = vadd.f32 %v951_v14, %v950_v10 }
 0x2aa   :  { %v953_v5 = vpop.f32.mrf.mxu0  ;;  %vm822_vm8 = vcmp.ge.f32.partialorder %v1263_v12, 0.0 }
 0x2ab   :  { %1043 = vrcp.f32 %v801_v15  ;;  %v782_v19 = vsub.f32 0.0, %v774_v17  ;;  %v1266_v21 = vadd.f32 %v952_v18, %v915_v38 }
 0x2ac   :  { %v1038_v20 = vpop.eup %1037  ;;  %1045 = vpow2.f32 %v793_v16  ;;  %v954_v4 = vpop.f32.mrf.mxu0 }
 0x2ad   :  { %v802_v22 = vadd.f32 1.0, %v1038_v20  ;;  %v795_v23 = vmul.f32 1.442695, %v782_v19  ;;  %v955_v24 = vadd.f32 %v954_v4, %v953_v5  ;;  %v775_v27 = vand.u32 2147483647, %v1266_v21 }
 0x2ae   :  { %vm823_vm9 = vcmp.ge.f32.partialorder %v1266_v21, 0.0 }
 0x2af   :  { %1047 = vrcp.f32 %v802_v22  ;;  %v1269_v28 = vadd.f32 %v955_v24, %v915_v38  ;;  %v783_v30 = vsub.f32 0.0, %v775_v27 }
 0x2b0   :  { %v1040_v29 = vpop.eup %1039  ;;  %1049 = vpow2.f32 %v795_v23 }
 0x2b1   :  { %v803_v31 = vadd.f32 1.0, %v1040_v29  ;;  %v776_v32 = vand.u32 2147483647, %v1269_v28  ;;  %v797_v33 = vmul.f32 1.442695, %v783_v30  ;;  %vm824_vm10 = vcmp.ge.f32.partialorder %v1269_v28, 0.0 }
 0x2b3   :  { %1051 = vrcp.f32 %v803_v31  ;;  %v784_v34 = vsub.f32 0.0, %v776_v32 }
 0x2b4   :  { %v1042_v35 = vpop.eup %1041  ;;  %1053 = vpow2.f32 %v797_v33 }
 0x2b5   :  { %v804_v36 = vadd.f32 1.0, %v1042_v35  ;;  %v799_v26 = vmul.f32 1.442695, %v784_v34 }
 0x2b7   :  { %1055 = vrcp.f32 %v804_v36 }
 0x2b8   :  { %v1044_v37 = vpop.eup %1043  ;;  %1057 = vpow2.f32 %v799_v26 }
 0x2b9   :  { %v1046_v39 = vpop.eup %1045  ;;  %v825_v1 = vmul.f32 %v1044_v37, %v1036_v13 }
 0x2ba   :  { %v805_v38 = vadd.f32 1.0, %v1046_v39 }
 0x2bb   :  { %v833_v25 = vsel %vm817_vm3, %v1044_v37, %v825_v1 }
 0x2bc   :  { %v1048_v41 = vpop.eup %1047  ;;  %842 = vst.msk [vmem:[%s1319_s7] sm:$0xff] %vm841_vm2, %v833_v25  ;;  %1059 = vrcp.f32 %v805_v38 }
 0x2bd   :  { %v1050_v0 = vpop.eup %1049  ;;  %v826_v2 = vmul.f32 %v1048_v41, %v1038_v20 }
 0x2be   :  { %v806_v42 = vadd.f32 1.0, %v1050_v0 }
 0x2bf   :  { %v834_v44 = vsel %vm818_vm4, %v1048_v41, %v826_v2 }
 0x2c0   :  { %v1052_v45 = vpop.eup %1051  ;;  %843 = vst.msk [vmem:[%s1319_s7 + $0x8] sm:$0xff] %vm841_vm2, %v834_v44  ;;  %1061 = vrcp.f32 %v806_v42 }
 0x2c1   :  { %v1054_v40 = vpop.eup %1053  ;;  %v827_v46 = vmul.f32 %v1052_v45, %v1040_v29 }
 0x2c2   :  { %v807_v47 = vadd.f32 1.0, %v1054_v40 }
 0x2c3   :  { %v835_v48 = vsel %vm819_vm5, %v1052_v45, %v827_v46 }
 0x2c4   :  { %v1056_v49 = vpop.eup %1055  ;;  %844 = vst.msk [vmem:[%s1319_s7 + $0x10] sm:$0xff] %vm841_vm2, %v835_v48  ;;  %1063 = vrcp.f32 %v807_v47 }
 0x2c5   :  { %v1058_v43 = vpop.eup %1057  ;;  %v828_v51 = vmul.f32 %v1056_v49, %v1042_v35 }
 0x2c6   :  { %v808_v52 = vadd.f32 1.0, %v1058_v43 }
 0x2c7   :  { %v836_v53 = vsel %vm820_vm6, %v1056_v49, %v828_v51 }
 0x2c8   :  { %845 = vst.msk [vmem:[%s1319_s7 + $0x18] sm:$0xff] %vm841_vm2, %v836_v53  ;;  %1065 = vrcp.f32 %v808_v52 }
 0x2c9   :  { %v1060_v50 = vpop.eup %1059 }
 0x2ca   :  { %v829_v54 = vmul.f32 %v1060_v50, %v1046_v39 }
 0x2cc   :  { %v837_v55 = vsel %vm821_vm7, %v1060_v50, %v829_v54 }
 0x2cd   :  { %v1062_v56 = vpop.eup %1061  ;;  %846 = vst.msk [vmem:[%s1319_s7 + $0x20] sm:$0xff] %vm841_vm2, %v837_v55 }
 0x2ce   :  { %v830_v57 = vmul.f32 %v1062_v56, %v1050_v0 }
 0x2d0   :  { %v838_v58 = vsel %vm822_vm8, %v1062_v56, %v830_v57 }
 0x2d1   :  { %v1064_v59 = vpop.eup %1063  ;;  %847 = vst.msk [vmem:[%s1319_s7 + $0x28] sm:$0xff] %vm841_vm2, %v838_v58 }
 0x2d2   :  { %v831_v60 = vmul.f32 %v1064_v59, %v1054_v40 }
 0x2d4   :  { %v839_v61 = vsel %vm823_vm9, %v1064_v59, %v831_v60 }
 0x2d5   :  { %v1066_v62 = vpop.eup %1065  ;;  %848 = vst.msk [vmem:[%s1319_s7 + $0x30] sm:$0xff] %vm841_vm2, %v839_v61 }
 0x2d6   :  { %v832_v63 = vmul.f32 %v1066_v62, %v1058_v43 }
 0x2d8   :  { %v840_v3 = vsel %vm824_vm10, %v1066_v62, %v832_v63 }
 0x2d9   :  { %849 = vst.msk [vmem:[%s1319_s7 + $0x38] sm:$0xff] %vm841_vm2, %v840_v3 }
 0x2da   :  { %854 = vsyncpa [#allocation4], 1 }
 0x2db   :  { %855 = vsyncpa [#allocation6], 1 }

</bundles_post_ra>
